<compile_context>
chip_gen: v7x
topology: tpu7x:2x2x1
jax: 0.10.0
libtpu: 0.0.40
codegen_flags: <defaults>
</compile_context>

<pallas_src>
import jax
import jax.numpy as jnp
from jax.experimental import pallas as pl
from jax.experimental.pallas import tpu as pltpu

_LANE = 128
_SUBLANE = 8

# Cached (weights-single-buffered, batch-dimension-semantics) config index that
# compiled successfully, so repeated calls skip the fallback cascade.
_BEST_GRID_CFG = None


def _round_up(x, m):
    return (x + m - 1) // m * m


def _vmem_cap_bytes():
    """~75% of per-core VMEM (gen-aware: ~96 MiB on v5e/v6e, ~48 MiB on v7x)."""
    try:
        cap = int(pltpu.get_tpu_info().vmem_capacity_bytes)
        return max(cap * 3 // 4, 16 << 20)
    except Exception:
        return 48 << 20  # conservative default that fits every generation


def _make_disc_kernel(n_parts):
    """Kernel: (b2, x..., w1_parts..., ps, out).  ps = [fc1 bias ; fc2 weight row]."""

    def kernel(*refs):
        b2_ref = refs[0]                               # (1, 1) SMEM scalar (fc2 bias)
        x_refs = refs[1:1 + n_parts]                   # (TB, D_i) activation tiles
        w_refs = refs[1 + n_parts:1 + 2 * n_parts]     # (D_i, H) bf16 resident weights
        ps_ref = refs[1 + 2 * n_parts]                 # (2, H) f32: row0=b1, row1=w2
        o_ref = refs[2 + 2 * n_parts]                  # (TB, 1) output

        # fc1: concat(x, att) @ W1 computed as a sum of per-part MXU matmuls
        # (bf16 inputs, f32 accumulation) -- no host-side concat or K padding.
        h = None
        for x_ref, w_ref in zip(x_refs, w_refs):
            part = jnp.dot(
                x_ref[...].astype(jnp.bfloat16),
                w_ref[...],
                preferred_element_type=jnp.float32,
            )
            h = part if h is None else h + part

        # bias + LeakyReLU(0.2) in f32 on the VPU.
        h = h + ps_ref[0:1, :]
        h = jnp.where(h >= 0, h, 0.2 * h)

        # fc2 (out_features == 1) as a lane reduction, then sigmoid, in f32.
        logits = jnp.sum(h * ps_ref[1:2, :], axis=-1, keepdims=True) + b2_ref[0, 0]
        o_ref[...] = jax.nn.sigmoid(logits).astype(o_ref.dtype)

    return kernel


def discriminator_d1_forward(x, att, params, *, block_b=1024):
    """Forward pass. x: (B, visual_dim), att: (B, attr_dim) or None.

    Returns (B, 1) float32 sigmoid scores, matching Discriminator_D1.forward.
    """
    parts = [x] if att is None else [x, att]
    B = int(parts[0].shape[0])
    dims = [int(p.shape[1]) for p in parts]
    H = int(params["w1"].shape[1])

    # Split the pre-transposed fc1 weight per input part and cast to bf16 for the
    # MXU (tiny, weight-only host work; activations are passed through untouched).
    w_parts, off = [], 0
    for d in dims:
        w_parts.append(params["w1"][off:off + d, :].astype(jnp.bfloat16))
        off += d
    ps = jnp.stack(
        [params["b1"].reshape(H), params["w2"].reshape(H)], axis=0
    ).astype(jnp.float32)
    b2 = params["b2"].reshape(1, 1).astype(jnp.float32)

    kernel = _make_disc_kernel(len(parts))
    out_shape = jax.ShapeDtypeStruct((B, 1), jnp.float32)
    cap = _vmem_cap_bytes()

    act_row_bytes = sum(d * p.dtype.itemsize for d, p in zip(dims, parts))
    w_bytes_total = sum(d * H * 2 for d in dims)  # bf16 weights
    min_itemsize = min(p.dtype.itemsize for p in parts)
    row_align = _SUBLANE * max(1, 4 // max(1, min_itemsize))  # 8 for f32, 16 for bf16

    def vmem_est(rows, act_bufs, w_bufs):
        return (act_bufs * rows * act_row_bytes
                + w_bufs * w_bytes_total
                + 2 * 2 * H * 4
                + act_bufs * rows * _LANE * 4)  # (rows,1) out tile pads to a lane

    # Batch tile: as large as the VMEM budget allows (amortizes per-grid-step
    # pipeline overhead), aligned to the sublane/packing requirement.
    TB = min(_round_up(B, row_align),
             max(row_align, (int(block_b) // row_align) * row_align))
    while TB > row_align and vmem_est(TB, 2, 2) + (4 << 20) > cap:
        TB = max(row_align, _round_up(TB // 2, row_align))
    num_tiles = pl.cdiv(B, TB)

    cost = pl.CostEstimate(
        flops=2 * B * H * (sum(dims) + 1),
        transcendentals=B,  # sigmoid
        bytes_accessed=B * act_row_bytes + w_bytes_total + 2 * H * 4 + 4 + B * 4,
    )

    if num_tiles == 1:
        # Degenerate small-batch case: no grid, no pipeline, whole arrays in VMEM.
        vmem_limit = min(cap, max(2 * vmem_est(max(B, row_align), 1, 1) + (4 << 20),
                                  16 << 20))
        return pl.pallas_call(
            kernel,
            out_shape=out_shape,
            in_specs=[pl.BlockSpec(memory_space=pltpu.MemorySpace.SMEM)]
                     + [pl.BlockSpec(memory_space=pltpu.MemorySpace.VMEM)]
                     * (2 * len(parts) + 1),
            out_specs=pl.BlockSpec(memory_space=pltpu.MemorySpace.VMEM),
            compiler_params=pltpu.CompilerParams(vmem_limit_bytes=vmem_limit),
            cost_estimate=cost,
        )(b2, *parts, *w_parts, ps)

    vmem_limit = min(cap, max(2 * vmem_est(TB, 2, 2) + (4 << 20), 16 << 20))

    def run(single_buffer_weights, batch_semantics):
        def const_spec(shape):
            # Grid-invariant blocks (weights / packed small params): request
            # single-buffering to halve their VMEM footprint when supported.
            if single_buffer_weights and hasattr(pl, "Buffered"):
                return pl.BlockSpec(shape, lambda i: (0,) * len(shape),
                                    pipeline_mode=pl.Buffered(1))
            return pl.BlockSpec(shape, lambda i: (0,) * len(shape))

        in_specs = [pl.BlockSpec(memory_space=pltpu.MemorySpace.SMEM)]       # b2
        in_specs += [pl.BlockSpec((TB, d), lambda i: (i, 0)) for d in dims]  # x / att
        in_specs += [const_spec((d, H)) for d in dims]                       # fc1 weights
        in_specs += [const_spec((2, H))]                                     # b1 / w2 row

        return pl.pallas_call(
            kernel,
            out_shape=out_shape,
            grid=(num_tiles,),
            in_specs=in_specs,
            out_specs=pl.BlockSpec((TB, 1), lambda i: (i, 0)),
            compiler_params=pltpu.CompilerParams(
                dimension_semantics=(batch_semantics,),
                vmem_limit_bytes=vmem_limit,
            ),
            cost_estimate=cost,
        )(b2, *parts, *w_parts, ps)

    # Feature cascade: prefer CORE_PARALLEL on the batch axis (uses both
    # TensorCores on v7x; harmless on 1-TC chips) and single-buffered resident
    # weights; fall back gracefully if the toolchain / generation rejects either.
    global _BEST_GRID_CFG
    core_par = getattr(pltpu, "CORE_PARALLEL", None)
    cfgs = []
    if core_par is not None:
        cfgs += [(True, core_par), (False, core_par)]
    cfgs += [(True, "parallel"), (False, "parallel")]

    if _BEST_GRID_CFG is not None:
        return run(*cfgs[min(_BEST_GRID_CFG, len(cfgs) - 1)])

    for idx, cfg in enumerate(cfgs[:-1]):
        try:
            out = run(*cfg)
            _BEST_GRID_CFG = idx
            return out
        except Exception:
            continue
    out = run(*cfgs[-1])
    _BEST_GRID_CFG = len(cfgs) - 1
    return out


def init_params(key, in_dim, d_hdim):
    """Mirrors weight_init: Linear weights ~ N(0, 0.02); small random biases."""
    k1, k2, k3, k4 = jax.random.split(key, 4)
    return {
        # stored as (in_features, out_features) == W.T relative to PyTorch
        "w1": 0.02 * jax.random.normal(k1, (in_dim, d_hdim), jnp.float32),
        "b1": 0.02 * jax.random.normal(k2, (d_hdim,), jnp.float32),
        "w2": 0.02 * jax.random.normal(k3, (d_hdim, 1), jnp.float32),
        "b2": 0.02 * jax.random.normal(k4, (1,), jnp.float32),
    }


def reference_forward(x, att, params):
    """Pure-JAX f32 reference of Discriminator_D1.forward for the sanity check."""
    h = x if att is None else jnp.concatenate([x, att], axis=1)
    h = h @ params["w1"] + params["b1"]
    h = jnp.where(h >= 0, h, 0.2 * h)
    return jax.nn.sigmoid(h @ params["w2"] + params["b2"])


if __name__ == "__main__":
    key = jax.random.PRNGKey(0)
    kx1, ka1, kx2, ka2, kp = jax.random.split(key, 5)

    # Small shapes consistent with the module: cvaegan mode -> concat(x, att).
    visual_dim, attr_dim, d_hdim = 64, 21, 128
    in_dim = visual_dim + attr_dim
    params = init_params(kp, in_dim, d_hdim)

    # Case 1: tiny batch -> single-invocation (no-grid) path.
    B1 = 8
    x1 = jax.random.normal(kx1, (B1, visual_dim), jnp.float32)
    a1 = jax.random.normal(ka1, (B1, attr_dim), jnp.float32)
    out1 = jax.block_until_ready(discriminator_d1_forward(x1, a1, params))
    ref1 = reference_forward(x1, a1, params)
    assert out1.shape == (B1, 1)
    assert jnp.allclose(out1, ref1, atol=3e-3, rtol=3e-3), float(
        jnp.max(jnp.abs(out1 - ref1))
    )

    # Case 2: multi-tile grid path with a ragged last tile (exercises the
    # pipelined / resident-weight path and boundary handling).
    B2 = 40
    x2 = jax.random.normal(kx2, (B2, visual_dim), jnp.float32)
    a2 = jax.random.normal(ka2, (B2, attr_dim), jnp.float32)
    out2 = jax.block_until_ready(
        discriminator_d1_forward(x2, a2, params, block_b=16)
    )
    ref2 = reference_forward(x2, a2, params)
    assert out2.shape == (B2, 1)
    assert jnp.allclose(out2, ref2, atol=3e-3, rtol=3e-3), float(
        jnp.max(jnp.abs(out2 - ref2))
    )

    print("KERNEL_OK")
</pallas_src>

<mosaic_0001>
module attributes {stable_mosaic.version = 11 : i64} {
  func.func @kernel(%arg0: memref<1x1xf32, #tpu.memory_space<smem>>, %arg1: memref<8x64xf32, #tpu.memory_space<vmem>>, %arg2: memref<8x21xf32, #tpu.memory_space<vmem>>, %arg3: memref<64x128xbf16, #tpu.memory_space<vmem>>, %arg4: memref<21x128xbf16, #tpu.memory_space<vmem>>, %arg5: memref<2x128xf32, #tpu.memory_space<vmem>>, %arg6: memref<8x1xf32, #tpu.memory_space<vmem>>) attributes {dimension_semantics = [], scalar_prefetch = 0 : i64, scratch_operands = 0 : i64, tpu.core_type = #tpu.core_type<tc>} {
    %c0 = arith.constant 0 : index
    %c0_0 = arith.constant 0 : index
    %0 = vector.load %arg1[%c0, %c0_0] : memref<8x64xf32, #tpu.memory_space<vmem>>, vector<8x64xf32>
    %1 = arith.truncf %0 : vector<8x64xf32> to vector<8x64xbf16>
    %c0_1 = arith.constant 0 : index
    %c0_2 = arith.constant 0 : index
    %2 = vector.load %arg3[%c0_1, %c0_2] : memref<64x128xbf16, #tpu.memory_space<vmem>>, vector<64x128xbf16>
    %cst = arith.constant dense<0.000000e+00> : vector<8x128xf32>
    %3 = tpu.matmul %1, %2, %cst {dimension_numbers = #tpu.dot_dimension_numbers<[1], [0], [0], [1], [0, 0, 1, 1], [], []>} : vector<8x64xbf16>, vector<64x128xbf16>, vector<8x128xf32> -> vector<8x128xf32>
    %c0_3 = arith.constant 0 : index
    %c0_4 = arith.constant 0 : index
    %4 = vector.load %arg2[%c0_3, %c0_4] : memref<8x21xf32, #tpu.memory_space<vmem>>, vector<8x21xf32>
    %5 = arith.truncf %4 : vector<8x21xf32> to vector<8x21xbf16>
    %c0_5 = arith.constant 0 : index
    %c0_6 = arith.constant 0 : index
    %6 = vector.load %arg4[%c0_5, %c0_6] : memref<21x128xbf16, #tpu.memory_space<vmem>>, vector<21x128xbf16>
    %cst_7 = arith.constant dense<0.000000e+00> : vector<8x128xf32>
    %7 = tpu.matmul %5, %6, %cst_7 {dimension_numbers = #tpu.dot_dimension_numbers<[1], [0], [0], [1], [0, 0, 1, 1], [], []>} : vector<8x21xbf16>, vector<21x128xbf16>, vector<8x128xf32> -> vector<8x128xf32>
    %8 = arith.addf %3, %7 : vector<8x128xf32>
    %c0_8 = arith.constant 0 : index
    %c0_9 = arith.constant 0 : index
    %9 = vector.load %arg5[%c0_8, %c0_9] : memref<2x128xf32, #tpu.memory_space<vmem>>, vector<1x128xf32>
    %10 = vector.broadcast %9 : vector<1x128xf32> to vector<8x128xf32>
    %11 = arith.addf %8, %10 : vector<8x128xf32>
    %cst_10 = arith.constant 0.000000e+00 : f32
    %12 = vector.broadcast %cst_10 : f32 to vector<8x128xf32>
    %13 = arith.cmpf oge, %11, %12 : vector<8x128xf32>
    %cst_11 = arith.constant 2.000000e-01 : f32
    %14 = vector.broadcast %cst_11 : f32 to vector<8x128xf32>
    %15 = arith.mulf %14, %11 : vector<8x128xf32>
    %16 = arith.select %13, %11, %15 : vector<8x128xi1>, vector<8x128xf32>
    %c1 = arith.constant 1 : index
    %c0_12 = arith.constant 0 : index
    %17 = vector.load %arg5[%c1, %c0_12] : memref<2x128xf32, #tpu.memory_space<vmem>>, vector<1x128xf32>
    %18 = vector.broadcast %17 : vector<1x128xf32> to vector<8x128xf32>
    %19 = arith.mulf %16, %18 : vector<8x128xf32>
    %cst_13 = arith.constant dense<0.000000e+00> : vector<8xf32>
    %20 = vector.multi_reduction <add>, %19, %cst_13 [1] : vector<8x128xf32> to vector<8xf32>
    %21 = vector.shape_cast %20 : vector<8xf32> to vector<8x1xf32>
    %c0_14 = arith.constant 0 : index
    %c0_15 = arith.constant 0 : index
    %22 = memref.load %arg0[%c0_14, %c0_15] : memref<1x1xf32, #tpu.memory_space<smem>>
    %23 = vector.broadcast %22 : f32 to vector<8x1xf32>
    %24 = arith.addf %21, %23 : vector<8x1xf32>
    %25 = arith.negf %24 : vector<8x1xf32>
    %26 = math.exp %25 : vector<8x1xf32>
    %cst_16 = arith.constant 1.000000e+00 : f32
    %27 = vector.broadcast %cst_16 : f32 to vector<8x1xf32>
    %28 = arith.addf %27, %26 : vector<8x1xf32>
    %29 = arith.divf %27, %28 : vector<8x1xf32>
    %c0_17 = arith.constant 0 : index
    %c0_18 = arith.constant 0 : index
    %30 = vector.load %arg6[%c0_17, %c0_18] : memref<8x1xf32, #tpu.memory_space<vmem>>, vector<8x1xf32>
    tpu.vector_store %arg6[%c0_17, %c0_18], %29 {strides = array<i32>} : memref<8x1xf32, #tpu.memory_space<vmem>>, vector<8x1xf32>,
    return
  }
}

</mosaic_0001>

<bundles_post_ra>
// kernel: tpu_custom_call.1
= control target key start
LH: loop header
LB: loop body
LE: loop exit
PB: predicated region body
PF: predicated region fallthrough
CT: control target
= control target key end

     0   :  { %12 = vsyncpa [#allocation4], 0  ;;  %s463_s0 = inlined_call_operand.<no memory space> [shape: f32[1,1], index: 0, kind: input, shape index: {}]   ;;  %s464_s1 = inlined_call_operand.hbm [shape: f32[8,64], index: 1, kind: input, shape index: {}]   ;;  %s465_s2 = inlined_call_operand.hbm [shape: f32[8,21], index: 2, kind: input, shape index: {}]   ;;  %s466_s3 = inlined_call_operand.hbm [shape: bf16[64,128], index: 3, kind: input, shape index: {}]   ;;  %s467_s4 = inlined_call_operand.vmem [shape: bf16[21,128], index: 4, kind: input, shape index: {}]   ;;  %s468_s5 = inlined_call_operand.vmem [shape: f32[2,128], index: 5, kind: input, shape index: {}]   ;;  %s469_s6 = inlined_call_operand.vmem [shape: f32[8,1], index: 6, kind: output, shape index: {}]  }
   0x1   :  { %13 = vsyncpa [#allocation6], 0  ;;  %s366_s21 = smov [#allocation5]   ;;  %s367_s23 = smov [#allocation3]  }
   0x2   :  { %s32_s22 = sshll.u32 %s366_s21, 4  ;;  %s22_s24 = sshll.u32 %s367_s23, 4  ;;  %s33_s22 = int_to_ptr.vmem [resolvable:$true] %s32_s22  ;;  %s23_s24 = int_to_ptr.vmem [resolvable:$true] %s22_s24 }
   0x3   :  { %s296_s27 = scalar_lea.hbm %s465_s2, 128 }
   0x4   :  { %p297_p0 = scmp.ne.s32.totalorder %s465_s2, %s296_s27  ;;  %p300_p1 = scmp.lt.u32.totalorder %s296_s27, %s465_s2 }
   0x6   :  { %p302_p2 = pnand %p300_p1, %p297_p0 }
   0x8   :  { %305 = shalt.err (!%p302_p2)
}
   0x9   :  { %s306_s8 = scalar_lea.vmem %s33_s22, 128  ;;  %p311_p4 = scmp.lt.s32.totalorder %s33_s22, %s33_s22 }
   0xa   :  { %p307_p3 = scmp.ne.s32.totalorder %s33_s22, %s306_s8  ;;  %p312_p5 = scmp.lt.s32.totalorder %s306_s8, %s306_s8 }
   0xc   :  { %p313_p6 = por %p312_p5, %p311_p4 }
   0xe   :  { %p314_p7 = pnand %p313_p6, %p307_p3 }
  0x10   :  { %317 = shalt.err (!%p314_p7)
}
  0x11   :  { %35 = dma.hbm_to_vmem [thread:$0]  %s465_s2, 128, %s33_s22, [#allocation6]  }
  0x12   :  { %s318_s13 = scalar_lea.hbm %s464_s1, 128 }
  0x13   :  { %p319_p8 = scmp.ne.s32.totalorder %s464_s1, %s318_s13  ;;  %p322_p9 = scmp.lt.u32.totalorder %s318_s13, %s464_s1 }
  0x15   :  { %p324_p10 = pnand %p322_p9, %p319_p8 }
  0x17   :  { %327 = shalt.err (!%p324_p10)
}
  0x18   :  { %s328_s18 = scalar_lea.vmem %s23_s24, 128  ;;  %p333_p12 = scmp.lt.s32.totalorder %s23_s24, %s23_s24 }
  0x19   :  { %p329_p11 = scmp.ne.s32.totalorder %s23_s24, %s328_s18  ;;  %p334_p13 = scmp.lt.s32.totalorder %s328_s18, %s328_s18 }
  0x1b   :  { %p335_p0 = por %p334_p13, %p333_p12 }
  0x1d   :  { %p336_p1 = pnand %p335_p0, %p329_p11 }
  0x1f   :  { %339 = shalt.err (!%p336_p1)
}
  0x20   :  { %25 = dma.hbm_to_vmem [thread:$0]  %s464_s1, 128, %s23_s24, [#allocation4]  }
  0x21   :  { %s368_s20 = smov [#allocation7]   ;;  %s340_s25 = scalar_lea.hbm %s466_s3, 512 }
  0x22   :  { %s41_s21 = sshll.u32 %s368_s20, 4  ;;  %p341_p2 = scmp.ne.s32.totalorder %s466_s3, %s340_s25  ;;  %s42_s21 = int_to_ptr.vmem [resolvable:$true] %s41_s21 }
  0x23   :  { %p344_p3 = scmp.lt.u32.totalorder %s340_s25, %s466_s3 }
  0x25   :  { %p346_p4 = pnand %p344_p3, %p341_p2 }
  0x27   :  { %349 = shalt.err (!%p346_p4)
}
  0x28   :  { %s350_s30 = scalar_lea.vmem %s42_s21, 512  ;;  %p355_p6 = scmp.lt.s32.totalorder %s42_s21, %s42_s21 }
  0x29   :  { %p351_p5 = scmp.ne.s32.totalorder %s42_s21, %s350_s30  ;;  %p356_p7 = scmp.lt.s32.totalorder %s350_s30, %s350_s30 }
  0x2b   :  { %p357_p8 = por %p356_p7, %p355_p6 }
  0x2d   :  { %p358_p9 = pnand %p357_p8, %p351_p5 }
  0x2f   :  { %361 = shalt.err (!%p358_p9)
}
  0x30   :  { %s369_s1 = smov 64   ;;  %s370_s24 = smov 4  }
  0x31   :  { %47 = dma.hbm_to_vmem [thread:$0]  %s466_s3, 512, %s42_s21, [#allocation6], %s369_s1, %s369_s1, %s370_s24  }
  0x32   :  { %362 = dma.done.wait [#allocation4], 128  }
  0x33   :  { %363 = vsyncadd [#allocation4], 4294967168 }
  0x34   :  { %364 = dma.done.wait [#allocation6], 640  }
  0x35   :  { %365 = vsyncadd [#allocation6], 4294966656  ;;  %v371_v0 = vmov 0.0   ;;  %vm372_vm0 = vmmov 0   ;;  %vm90_vm1 = vcmask 1041408   ;;  %vm91_vm2 = vcmask 1042432  }
  0x36   :  { %266 = vmatprep.subr.bf16.mxu1 %v371_v0  ;;  %258 = vmatprep.subr.bf16.mxu0 %v371_v0  ;;  %v286_v1 = vld [vmem:[#allocation7] sm:$0xff]   ;;  %v373_v2 = vmov 65535   ;;  %v287_v4 = vld [vmem:[#allocation7 + $0x8] sm:$0xff]   ;;  %v288_v5 = vld [vmem:[%s467_s4] sm:$0xff]   ;;  %vm86_vm3 = vcmask 171008   ;;  %vm161_vm4 = vcmask 523264   ;;  %v223_v30 = vstv %s463_s0 }
  0x37   :  { %262 = vmatprep.mubr.msk.bf16.mxu0 %vm372_vm0, %v371_v0  ;;  %274 = vmatprep.mubr.msk.bf16.mxu1 %vm372_vm0, %v371_v0  ;;  %v92_v3 = vsel %vm90_vm1, 4294967295, %v373_v2  ;;  %v290_v7 = vld [vmem:[%s467_s4 + $0x8] ss:$0 sps:$4 sm:$0x77]   ;;  %v289_v9 = vld [vmem:[#allocation7 + $0x10] sm:$0xff]   ;;  %vm231_vm6 = vcmask 7168  }
  0x38   :  { %267 = vmatpush3.bf16.msra.mxu1 %v286_v1  ;;  %v93_v6 = vsel %vm91_vm2, %v92_v3, 0  ;;  %259 = vmatpush3.bf16.msra.mxu0 %v288_v5  ;;  %v72_v8 = vld [vmem:[#allocation5] sm:$0xff]  ;;  %v62_v13 = vld [vmem:[#allocation3] sm:$0xff] }
  0x39   :  { %268 = vmatprep.subr.bf16.mxu1 %v371_v0  ;;  %260 = vmatprep.subr.bf16.mxu0 %v371_v0  ;;  %v95_v10 = vand.u32 %v290_v7, %v93_v6  ;;  %v73_v11 = vpack.c.bf16 %v72_v8, %v72_v8  ;;  %v291_v12 = vld [vmem:[#allocation7 + $0x18] sm:$0xff]   ;;  %v63_v14 = vpack.c.bf16 %v62_v13, %v62_v13  ;;  %v247_v20 = vld [vmem:[%s468_s5] ss:$0 sm:$0xff]  ;;  %v248_v27 = vld [vmem:[%s468_s5 + $0x1] ss:$0 sm:$0xff] }
  0x3c   :  { %269 = vmatpush3.bf16.msra.mxu1 %v287_v4  ;;  %261 = vmatpush3.bf16.msra.mxu0 %v95_v10 }
  0x3d   :  { %270 = vmatprep.subr.bf16.mxu1 %v371_v0 }
  0x3f   :  { %263 = vmatmul.mubr.msk.bf16.vlgmr.msra.gmra.mrb[0].mxu0 %vm86_vm3, %v73_v11 }
  0x40   :  { %271 = vmatpush3.bf16.msra.mxu1 %v289_v9 }
  0x41   :  { %272 = vmatprep.subr.bf16.mxu1 %v371_v0 }
  0x44   :  { %273 = vmatpush3.bf16.msra.mxu1 %v291_v12 }
  0x47   :  { %275 = vmatmul.mubr.msk.bf16.vlgmr.msra.gmra.mrb[0].mxu1 %vm161_vm4, %v63_v14 }
 0x112   :  { %v131_v15 = vpop.f32.mrb[0].mxu0 }
 0x113   :  { %v264_v16 = vpop.f32.mrb[1].mxu0 }
 0x114   :  { %v134_v17 = vpop.f32.mrb[2].mxu0 }
 0x115   :  { %v265_v18 = vpop.f32.mrb[3].mxu0 }
 0x11a   :  { %v199_v19 = vpop.f32.mrb[0].mxu1 }
 0x11b   :  { %v200_v21 = vadd.f32 %v199_v19, %v131_v15  ;;  %v276_v22 = vpop.f32.mrb[1].mxu1 }
 0x11c   :  { %v202_v23 = vpop.f32.mrb[2].mxu1 }
 0x11d   :  { %v210_v24 = vadd.f32 %v247_v20, %v200_v21  ;;  %v277_v25 = vpop.f32.mrb[3].mxu1 }
 0x11f   :  { %vm211_vm5 = vcmp.ge.f32.partialorder %v210_v24, 0.0  ;;  %v212_v26 = vmul.f32 0.2, %v210_v24 }
 0x121   :  { %v213_v28 = vsel %vm211_vm5, %v210_v24, %v212_v26 }
 0x122   :  { %v219_v29 = vmul.f32 %v248_v27, %v213_v28 }
 0x124   :  { %220 = vadd.xlane.f32.xlu0 %v219_v29 }
 0x1b1   :  { %v221_v31 = vpop.xlane.xlu0 %220 }
 0x1b2   :  { %v224_v32 = vadd.f32 %v223_v30, %v221_v31 }
 0x1b4   :  { %v249_v33 = vmul.f32 -1.442695, %v224_v32 }
 0x1b6   :  { %292 = vpow2.f32 %v249_v33 }
 0x1c0   :  { %v293_v34 = vpop.eup %292 }
 0x1c1   :  { %v228_v35 = vadd.f32 1.0, %v293_v34 }
 0x1c3   :  { %294 = vrcp.f32 %v228_v35 }
 0x1cd   :  { %v295_v36 = vpop.eup %294 }
 0x1ce   :  { %232 = vst.msk [vmem:[%s469_s6] sm:$0xff] %vm231_vm6, %v295_v36 }
 0x1cf   :  { %237 = vsyncpa [#allocation4], 1 }
 0x1d0   :  { %238 = vsyncpa [#allocation6], 1 }

</bundles_post_ra>
